<compile_context>
chip_gen: v7x
topology: tpu7x:2x2x1
jax: 0.10.0
libtpu: 0.0.40
codegen_flags: <defaults>
</compile_context>

<pallas_src>
import functools

import jax
import jax.numpy as jnp
from jax.experimental import pallas as pl
from jax.experimental.pallas import tpu as pltpu


def _round_up(x, m):
    return ((x + m - 1) // m) * m


def _cdiv(a, b):
    return -(-a // b)


def _device_kind():
    try:
        return jax.devices()[0].device_kind.lower()
    except Exception:
        return ""


def _vmem_budget_bytes():
    """~75% of per-core physical VMEM (headroom for compiler scratch/sems)."""
    phys = None
    try:
        phys = int(pltpu.get_tpu_info().vmem_capacity_bytes)
    except Exception:
        phys = None
    if not phys:
        kind = _device_kind()
        if "v7" in kind:
            phys = 64 << 20
        elif "v5" in kind or "v6" in kind:
            phys = 128 << 20
        else:
            phys = 64 << 20  # conservative default for unknown parts
    return int(phys * 3 // 4)


def ffn_resident_kernel(x_ref, w1_ref, b1_ref, w2_ref, b2_ref, o_ref):
    # h = relu(x @ W1 + b1) with f32 accumulation on the MXU.
    h = jnp.dot(x_ref[...], w1_ref[...], preferred_element_type=jnp.float32)
    h = jnp.maximum(h + b1_ref[...], 0.0)
    # TODO(synk): dropout is inference-mode identity (PyTorch eval()); training
    # masking would need pltpu.prng_seed + pltpu.prng_random_bits per tile.
    out = jnp.dot(h.astype(w2_ref.dtype), w2_ref[...],
                  preferred_element_type=jnp.float32)
    o_ref[...] = (out + b2_ref[...]).astype(o_ref.dtype)


def ffn_streaming_kernel(x_ref, w1_ref, b1_ref, w2_ref, b2_ref, o_ref, acc_ref):
    k = pl.program_id(1)

    @pl.when(k == 0)
    def _():
        acc_ref[...] = jnp.zeros_like(acc_ref)

    # hidden tile: relu(x @ W1[:, k-tile] + b1[k-tile])  (f32 accumulation)
    h = jnp.dot(x_ref[...], w1_ref[...], preferred_element_type=jnp.float32)
    h = jnp.maximum(h + b1_ref[...], 0.0)
    # TODO(synk): dropout identity (inference); training mask needs pltpu PRNG.

    # acc += h @ W2[k-tile, :]
    acc_ref[...] += jnp.dot(h.astype(w2_ref.dtype), w2_ref[...],
                            preferred_element_type=jnp.float32)

    @pl.when(k == pl.num_programs(1) - 1)
    def _():
        o_ref[...] = (acc_ref[...] + b2_ref[...]).astype(o_ref.dtype)


@functools.partial(jax.jit,
                   static_argnames=("tm", "tf", "cast_to_bf16", "_force_path"))
def feed_forward(x, w1, b1, w2, b2, *, tm=None, tf=512, cast_to_bf16=False,
                 _force_path=None):
    """x: [B, S, d_model] -> [B, S, d_model].  w1:(d_model,d_ff), w2:(d_ff,d_model)."""
    B, S, d_model = x.shape
    d_ff = w1.shape[1]
    N = B * S
    out_dtype = x.dtype

    if cast_to_bf16:
        # Opt-in bf16 operands (f32 MXU accumulation kept): ~2x MXU rate and
        # half the operand bytes on v6e/v7x, at a small numeric divergence.
        x = x.astype(jnp.bfloat16)
        w1 = w1.astype(jnp.bfloat16)
        w2 = w2.astype(jnp.bfloat16)

    x_isz = x.dtype.itemsize
    w_isz = w1.dtype.itemsize
    o_isz = out_dtype.itemsize

    kind = _device_kind()
    vmem_budget = _vmem_budget_bytes()
    headroom = 4 << 20

    # Sublane packing: 8 rows for 4-byte, 16 for 2-byte, 32 for 1-byte dtypes.
    row_align = {4: 8, 2: 16, 1: 32}.get(x_isz, 8)
    d_model_p = _round_up(d_model, 128)

    def row_tiles(tm_req):
        """Aligned row tile <= tm_req, with >=2 row tiles when possible (v7x)."""
        n_al = _round_up(N, row_align)
        want = max(_cdiv(n_al, tm_req), 2 if n_al >= 2 * row_align else 1)
        tm_e = _round_up(_cdiv(n_al, want), row_align)
        n_pad = _round_up(N, tm_e)
        return tm_e, n_pad, n_pad // tm_e

    # ------------------------- path selection -------------------------
    d_ff_res = _round_up(d_ff, 128)
    tm_res, N_p_res, rows_res = row_tiles(tm if tm is not None else 512)
    resident_bytes = (
        2 * d_model_p * d_ff_res * w_isz          # W1 (double-buffer worst case)
        + 2 * d_ff_res * d_model_p * w_isz        # W2
        + 2 * tm_res * d_model_p * x_isz          # x tiles
        + 2 * tm_res * d_model_p * o_isz          # out tiles
        + tm_res * d_ff_res * 4                   # f32 hidden intermediate
        + 2 * 8 * (d_ff_res + d_model_p) * 4)     # biases (sublane-padded)
    if _force_path == "resident":
        use_resident = True
    elif _force_path == "streaming":
        use_resident = False
    else:
        use_resident = resident_bytes + headroom <= vmem_budget

    if use_resident:
        tm_eff, N_p, n_rows = tm_res, N_p_res, rows_res
        d_ff_p = d_ff_res
        tf_eff = d_ff_p
    else:
        tf_eff = max(128, _round_up(tf, 128))
        tm_req = tm if tm is not None else (1024 if "v6" in kind else 512)
        while True:
            d_ff_p = _round_up(d_ff, tf_eff)
            tm_eff, N_p, n_rows = row_tiles(tm_req)
            stream_bytes = (
                2 * tm_eff * d_model_p * x_isz        # x tiles
                + 2 * d_model_p * tf_eff * w_isz      # W1 tile
                + 2 * tf_eff * d_model_p * w_isz      # W2 tile
                + 2 * tm_eff * d_model_p * o_isz      # out tiles
                + tm_eff * d_model_p * 4              # f32 accumulator
                + tm_eff * tf_eff * 4                 # f32 hidden tile
                + 2 * 8 * (tf_eff + d_model_p) * 4)   # bias tiles
            if (stream_bytes + headroom <= vmem_budget
                    or (tm_req <= 256 and tf_eff <= 128)):
                break
            if tm_req > 256:
                tm_req = max(256, tm_req // 2)
            else:
                tf_eff = max(128, tf_eff // 2)

    # --------------------------- padding ---------------------------
    x2 = jnp.pad(x.reshape(N, d_model),
                 ((0, N_p - N), (0, d_model_p - d_model)))
    w1p = jnp.pad(w1, ((0, d_model_p - d_model), (0, d_ff_p - d_ff)))
    b1p = jnp.pad(b1.reshape(1, d_ff), ((0, 0), (0, d_ff_p - d_ff)))
    w2p = jnp.pad(w2, ((0, d_ff_p - d_ff), (0, d_model_p - d_model)))
    b2p = jnp.pad(b2.reshape(1, d_model), ((0, 0), (0, d_model_p - d_model)))

    flops = 4 * N_p * d_model_p * d_ff_p
    weight_bytes = (w1p.size * w1p.dtype.itemsize
                    + b1p.size * b1p.dtype.itemsize
                    + w2p.size * w2p.dtype.itemsize)
    io_bytes = (x2.size * x2.dtype.itemsize
                + b2p.size * b2p.dtype.itemsize
                + N_p * d_model_p * o_isz)

    if use_resident:
        out2 = pl.pallas_call(
            ffn_resident_kernel,
            out_shape=jax.ShapeDtypeStruct((N_p, d_model_p), out_dtype),
            grid_spec=pltpu.PrefetchScalarGridSpec(
                num_scalar_prefetch=0,
                grid=(n_rows,),
                in_specs=[
                    pl.BlockSpec((tm_eff, d_model_p), lambda i: (i, 0)),   # x
                    pl.BlockSpec((d_model_p, d_ff_p), lambda i: (0, 0)),   # W1 resident
                    pl.BlockSpec((1, d_ff_p), lambda i: (0, 0)),           # b1
                    pl.BlockSpec((d_ff_p, d_model_p), lambda i: (0, 0)),   # W2 resident
                    pl.BlockSpec((1, d_model_p), lambda i: (0, 0)),        # b2
                ],
                out_specs=pl.BlockSpec((tm_eff, d_model_p), lambda i: (i, 0)),
            ),
            compiler_params=pltpu.CompilerParams(
                dimension_semantics=("parallel",),
                vmem_limit_bytes=vmem_budget,
            ),
            cost_estimate=pl.CostEstimate(
                flops=flops, transcendentals=0,
                bytes_accessed=io_bytes + weight_bytes),   # weights read once
        )(x2, w1p, b1p, w2p, b2p)
    else:
        out2 = pl.pallas_call(
            ffn_streaming_kernel,
            out_shape=jax.ShapeDtypeStruct((N_p, d_model_p), out_dtype),
            grid_spec=pltpu.PrefetchScalarGridSpec(
                num_scalar_prefetch=0,
                grid=(n_rows, d_ff_p // tf_eff),
                in_specs=[
                    pl.BlockSpec((tm_eff, d_model_p), lambda i, k: (i, 0)),  # x
                    pl.BlockSpec((d_model_p, tf_eff), lambda i, k: (0, k)),  # W1
                    pl.BlockSpec((1, tf_eff), lambda i, k: (0, k)),          # b1
                    pl.BlockSpec((tf_eff, d_model_p), lambda i, k: (k, 0)),  # W2
                    pl.BlockSpec((1, d_model_p), lambda i, k: (0, 0)),       # b2
                ],
                out_specs=pl.BlockSpec((tm_eff, d_model_p), lambda i, k: (i, 0)),
                scratch_shapes=[pltpu.VMEM((tm_eff, d_model_p), jnp.float32)],
            ),
            compiler_params=pltpu.CompilerParams(
                dimension_semantics=("parallel", "arbitrary"),
                vmem_limit_bytes=vmem_budget,
            ),
            cost_estimate=pl.CostEstimate(
                flops=flops, transcendentals=0,
                # weights are re-streamed once per row tile in this layout
                bytes_accessed=io_bytes + n_rows * weight_bytes),
        )(x2, w1p, b1p, w2p, b2p)

    return out2[:N, :d_model].reshape(B, S, d_model)


def init_params(key, d_model, d_ff, dtype=jnp.float32):
    # Deterministic init mimicking nn.Linear's uniform(-1/sqrt(fan_in), +).
    k1, k2, k3, k4 = jax.random.split(key, 4)
    bound1 = 1.0 / (d_model ** 0.5)
    bound2 = 1.0 / (d_ff ** 0.5)
    # Stored already transposed: (in, out).
    w1 = jax.random.uniform(k1, (d_model, d_ff), dtype, -bound1, bound1)
    b1 = jax.random.uniform(k2, (1, d_ff), dtype, -bound1, bound1)
    w2 = jax.random.uniform(k3, (d_ff, d_model), dtype, -bound2, bound2)
    b2 = jax.random.uniform(k4, (1, d_model), dtype, -bound2, bound2)
    return w1, b1, w2, b2


if __name__ == "__main__":
    key = jax.random.PRNGKey(0)
    kx, kp, kx2, kp2 = jax.random.split(key, 4)

    # Test 1: default path (weight-resident, weights DMA'd once).
    B, S, d_model, d_ff = 2, 8, 32, 128
    x = jax.random.normal(kx, (B, S, d_model), jnp.float32)
    w1, b1, w2, b2 = init_params(kp, d_model, d_ff)
    out = feed_forward(x, w1, b1, w2, b2)
    jax.block_until_ready(out)
    ref = jnp.maximum(x @ w1 + b1[0], 0.0) @ w2 + b2[0]
    assert out.shape == (B, S, d_model)
    assert jnp.allclose(out, ref, atol=1e-4, rtol=1e-4)

    # Test 2: exercise the streaming/accumulator path on a small shape.
    B2, S2, d_model2, d_ff2 = 2, 16, 64, 512
    x_b = jax.random.normal(kx2, (B2, S2, d_model2), jnp.float32)
    p_b = init_params(kp2, d_model2, d_ff2)
    out_b = feed_forward(x_b, *p_b, tf=128, _force_path="streaming")
    jax.block_until_ready(out_b)
    ref_b = jnp.maximum(x_b @ p_b[0] + p_b[1][0], 0.0) @ p_b[2] + p_b[3][0]
    assert out_b.shape == (B2, S2, d_model2)
    assert jnp.allclose(out_b, ref_b, atol=1e-4, rtol=1e-4)

    print("KERNEL_OK")
</pallas_src>

<mosaic_0001>
module attributes {stable_mosaic.version = 11 : i64} {
  func.func @ffn_resident_kernel(%arg0: i32, %arg1: memref<8x128xf32, #tpu.memory_space<vmem>>, %arg2: memref<128x128xf32, #tpu.memory_space<vmem>>, %arg3: memref<1x128xf32, #tpu.memory_space<vmem>>, %arg4: memref<128x128xf32, #tpu.memory_space<vmem>>, %arg5: memref<1x128xf32, #tpu.memory_space<vmem>>, %arg6: memref<8x128xf32, #tpu.memory_space<vmem>>) attributes {dimension_semantics = [#tpu.dimension_semantics<parallel>], iteration_bounds = array<i64: 2>, scalar_prefetch = 0 : i64, scratch_operands = 0 : i64, tpu.core_type = #tpu.core_type<tc>, window_params = [{transform_indices = @transform_0, window_bounds = array<i64: 8, 128>}, {pipeline_mode = #tpu.pipeline_mode<synchronous>, transform_indices = @transform_1, window_bounds = array<i64: 128, 128>}, {pipeline_mode = #tpu.pipeline_mode<synchronous>, transform_indices = @transform_2, window_bounds = array<i64: 1, 128>}, {pipeline_mode = #tpu.pipeline_mode<synchronous>, transform_indices = @transform_3, window_bounds = array<i64: 128, 128>}, {pipeline_mode = #tpu.pipeline_mode<synchronous>, transform_indices = @transform_4, window_bounds = array<i64: 1, 128>}, {transform_indices = @transform_5, window_bounds = array<i64: 8, 128>}]} {
    %c0 = arith.constant 0 : index
    %c0_0 = arith.constant 0 : index
    %0 = vector.load %arg1[%c0, %c0_0] : memref<8x128xf32, #tpu.memory_space<vmem>>, vector<8x128xf32>
    %c0_1 = arith.constant 0 : index
    %c0_2 = arith.constant 0 : index
    %1 = vector.load %arg2[%c0_1, %c0_2] : memref<128x128xf32, #tpu.memory_space<vmem>>, vector<128x128xf32>
    %cst = arith.constant dense<0.000000e+00> : vector<8x128xf32>
    %2 = tpu.matmul %0, %1, %cst {dimension_numbers = #tpu.dot_dimension_numbers<[1], [0], [0], [1], [0, 0, 1, 1], [], []>} : vector<8x128xf32>, vector<128x128xf32>, vector<8x128xf32> -> vector<8x128xf32>
    %c0_3 = arith.constant 0 : index
    %c0_4 = arith.constant 0 : index
    %3 = vector.load %arg3[%c0_3, %c0_4] : memref<1x128xf32, #tpu.memory_space<vmem>>, vector<1x128xf32>
    %4 = vector.broadcast %3 : vector<1x128xf32> to vector<8x128xf32>
    %5 = arith.addf %2, %4 : vector<8x128xf32>
    %cst_5 = arith.constant 0.000000e+00 : f32
    %6 = vector.broadcast %cst_5 : f32 to vector<8x128xf32>
    %7 = arith.maximumf %5, %6 : vector<8x128xf32>
    %c0_6 = arith.constant 0 : index
    %c0_7 = arith.constant 0 : index
    %8 = vector.load %arg4[%c0_6, %c0_7] : memref<128x128xf32, #tpu.memory_space<vmem>>, vector<128x128xf32>
    %cst_8 = arith.constant dense<0.000000e+00> : vector<8x128xf32>
    %9 = tpu.matmul %7, %8, %cst_8 {dimension_numbers = #tpu.dot_dimension_numbers<[1], [0], [0], [1], [0, 0, 1, 1], [], []>} : vector<8x128xf32>, vector<128x128xf32>, vector<8x128xf32> -> vector<8x128xf32>
    %c0_9 = arith.constant 0 : index
    %c0_10 = arith.constant 0 : index
    %10 = vector.load %arg5[%c0_9, %c0_10] : memref<1x128xf32, #tpu.memory_space<vmem>>, vector<1x128xf32>
    %11 = vector.broadcast %10 : vector<1x128xf32> to vector<8x128xf32>
    %12 = arith.addf %9, %11 : vector<8x128xf32>
    %c0_11 = arith.constant 0 : index
    %c0_12 = arith.constant 0 : index
    %13 = vector.load %arg6[%c0_11, %c0_12] : memref<8x128xf32, #tpu.memory_space<vmem>>, vector<8x128xf32>
    tpu.vector_store %arg6[%c0_11, %c0_12], %12 {strides = array<i32>} : memref<8x128xf32, #tpu.memory_space<vmem>>, vector<8x128xf32>,
    return
  }
  func.func @transform_0(%arg0: i32) -> (i32, i32) {
    %c0_i32 = arith.constant 0 : i32
    %c0_i32_0 = arith.constant 0 : i32
    return %arg0, %c0_i32 : i32, i32
  }
  func.func @transform_1(%arg0: i32) -> (i32, i32) {
    %c0_i32 = arith.constant 0 : i32
    %c0_i32_0 = arith.constant 0 : i32
    %c0_i32_1 = arith.constant 0 : i32
    return %c0_i32, %c0_i32_0 : i32, i32
  }
  func.func @transform_2(%arg0: i32) -> (i32, i32) {
    %c0_i32 = arith.constant 0 : i32
    %c0_i32_0 = arith.constant 0 : i32
    %c0_i32_1 = arith.constant 0 : i32
    return %c0_i32, %c0_i32_0 : i32, i32
  }
  func.func @transform_3(%arg0: i32) -> (i32, i32) {
    %c0_i32 = arith.constant 0 : i32
    %c0_i32_0 = arith.constant 0 : i32
    %c0_i32_1 = arith.constant 0 : i32
    return %c0_i32, %c0_i32_0 : i32, i32
  }
  func.func @transform_4(%arg0: i32) -> (i32, i32) {
    %c0_i32 = arith.constant 0 : i32
    %c0_i32_0 = arith.constant 0 : i32
    %c0_i32_1 = arith.constant 0 : i32
    return %c0_i32, %c0_i32_0 : i32, i32
  }
  func.func @transform_5(%arg0: i32) -> (i32, i32) {
    %c0_i32 = arith.constant 0 : i32
    %c0_i32_0 = arith.constant 0 : i32
    return %arg0, %c0_i32 : i32, i32
  }
}

</mosaic_0001>

<bundles_post_ra>
// kernel: feed_forward.1
= control target key start
LH: loop header
LB: loop body
LE: loop exit
PB: predicated region body
PF: predicated region fallthrough
CT: control target
= control target key end

     0   :  { %s677_s18 = smov 0   ;;  %s819_s0 = inlined_call_operand.vmem [shape: f32[16,128], index: 0, kind: input, shape index: {}]   ;;  %s820_s1 = inlined_call_operand.vmem [shape: f32[128,128], index: 1, kind: input, shape index: {}]   ;;  %s821_s2 = inlined_call_operand.vmem [shape: f32[1,128], index: 2, kind: input, shape index: {}]   ;;  %s822_s3 = inlined_call_operand.vmem [shape: f32[128,128], index: 3, kind: input, shape index: {}]   ;;  %s823_s4 = inlined_call_operand.vmem [shape: f32[1,128], index: 4, kind: input, shape index: {}]   ;;  %s824_s5 = inlined_call_operand.vmem [shape: f32[16,128], index: 5, kind: output, shape index: {}]  }
   0x1 LB: > { %s462_s19 = sadd.s32 4294967295, %s642_s18   ;;  %p466_p0 = scmp.ge.s32.totalorder %s642_s18, 1  ;;  %s642_s18 = sphi %s677_s18, %s15_s18  }
   0x2   : > { %p186_p1 = scmp.lt.s32.totalorder %s642_s18, 3 }
   0x4   : > { %p187_p2 = pnand %p466_p0, %p186_p1 }
   0x5   : > { %v221_v0 = vld [vmem:[%s820_s1] sm:$0xff] (!%p187_p2)  ;;  %v222_v1 = vld [vmem:[%s820_s1 + $0x8] sm:$0xff] (!%p187_p2)  ;;  %v223_v2 = vld [vmem:[%s820_s1 + $0x10] sm:$0xff] (!%p187_p2)  ;;  %v644_v3 = vmov (!%p187_p2), 0.0|0.0   ;;  %vm645_vm0 = vmmov (!%p187_p2), 0   ;;  %v646_v6 = vmov (!%p187_p2), 0.0  }
   0x6   : > { %190 = sbr.rel (%p187_p2) target bundleno = 470 (0x1d6), region = 40  ;;  %577 = vmatprep.subr.bf16.mxu0 (!%p187_p2), %v644_v3  ;;  %v578_v4 = vpack.c.bf16 (!%p187_p2), %v222_v1, %v221_v0  ;;  %v224_v5 = vld [vmem:[%s820_s1 + $0x18] sm:$0xff] (!%p187_p2)  ;;  %539 = vmatprep.mubr.msk.f32.mxu0 (!%p187_p2), %vm645_vm0, %v646_v6  ;;  %v225_v8 = vld [vmem:[%s820_s1 + $0x20] sm:$0xff] (!%p187_p2)  ;;  %v226_v9 = vld [vmem:[%s820_s1 + $0x28] sm:$0xff] (!%p187_p2)  ;;  %p212_p3 = scmp.lt.s32.totalorder (!%p187_p2), %s462_s19, 1 }
   0x7   : > { %601 = vmatprep.subr.bf16.mxu1 (!%p187_p2), %v644_v3  ;;  %574 = vmatprep.mubr.msk.f32.mxu1 (!%p187_p2), %vm645_vm0, %v646_v6  ;;  %v581_v7 = vpack.c.bf16 (!%p187_p2), %v224_v5, %v223_v2  ;;  %v315_v10 = vld [vmem:[%s822_s3] sm:$0xff] (!%p187_p2)  ;;  %v316_v11 = vld [vmem:[%s822_s3 + $0x8] sm:$0xff] (!%p187_p2)  ;;  %v317_v13 = vld [vmem:[%s822_s3 + $0x10] sm:$0xff] (!%p187_p2)  ;;  %v584_v15 = vpack.c.bf16 (!%p187_p2), %v226_v9, %v225_v8 }
   0x8   : > { %579 = vmatpush3.bf16.msra.mxu0 (!%p187_p2), %v578_v4  ;;  %v602_v12 = vpack.c.bf16 (!%p187_p2), %v316_v11, %v315_v10  ;;  %v318_v14 = vld [vmem:[%s822_s3 + $0x18] sm:$0xff] (!%p187_p2)  ;;  %v227_v16 = vld [vmem:[%s820_s1 + $0x30] sm:$0xff] (!%p187_p2)  ;;  %v319_v19 = vld [vmem:[%s822_s3 + $0x20] sm:$0xff] (!%p187_p2) }
   0x9   : > { %580 = vmatprep.subr.bf16.mxu0 (!%p187_p2), %v644_v3  ;;  %v228_v17 = vld [vmem:[%s820_s1 + $0x38] sm:$0xff] (!%p187_p2)  ;;  %v605_v18 = vpack.c.bf16 (!%p187_p2), %v318_v14, %v317_v13  ;;  %v320_v20 = vld [vmem:[%s822_s3 + $0x28] sm:$0xff] (!%p187_p2)  ;;  %v229_v22 = vld [vmem:[%s820_s1 + $0x40] sm:$0xff] (!%p187_p2) }
   0xa   : > { %603 = vmatpush3.bf16.msra.mxu1 (!%p187_p2), %v602_v12  ;;  %v587_v21 = vpack.c.bf16 (!%p187_p2), %v228_v17, %v227_v16  ;;  %v230_v23 = vld [vmem:[%s820_s1 + $0x48] sm:$0xff] (!%p187_p2)  ;;  %v608_v24 = vpack.c.bf16 (!%p187_p2), %v320_v20, %v319_v19  ;;  %v321_v25 = vld [vmem:[%s822_s3 + $0x30] sm:$0xff] (!%p187_p2)  ;;  %v322_v26 = vld [vmem:[%s822_s3 + $0x38] sm:$0xff] (!%p187_p2) }
   0xb   : > { %604 = vmatprep.subr.bf16.mxu1 (!%p187_p2), %v644_v3  ;;  %v590_v27 = vpack.c.bf16 (!%p187_p2), %v230_v23, %v229_v22  ;;  %v231_v28 = vld [vmem:[%s820_s1 + $0x50] sm:$0xff] (!%p187_p2)  ;;  %v232_v29 = vld [vmem:[%s820_s1 + $0x58] sm:$0xff] (!%p187_p2)  ;;  %v611_v30 = vpack.c.bf16 (!%p187_p2), %v322_v26, %v321_v25  ;;  %v323_v31 = vld [vmem:[%s822_s3 + $0x40] sm:$0xff] (!%p187_p2) }
   0xc   : > { %582 = vmatpush3.bf16.msra.mxu0 (!%p187_p2), %v581_v7  ;;  %v324_v32 = vld [vmem:[%s822_s3 + $0x48] sm:$0xff] (!%p187_p2)  ;;  %v593_v33 = vpack.c.bf16 (!%p187_p2), %v232_v29, %v231_v28  ;;  %v233_v34 = vld [vmem:[%s820_s1 + $0x60] sm:$0xff] (!%p187_p2)  ;;  %v325_v37 = vld [vmem:[%s822_s3 + $0x50] sm:$0xff] (!%p187_p2) }
   0xd   : > { %583 = vmatprep.subr.bf16.mxu0 %v644_v3  ;;  %v234_v35 = vld [vmem:[%s820_s1 + $0x68] sm:$0xff]  ;;  %v614_v36 = vpack.c.bf16 %v324_v32, %v323_v31  ;;  %s826_s19 = smov (!%p212_p3, %s462_s19), 1  ;;  %v326_v38 = vld [vmem:[%s822_s3 + $0x58] sm:$0xff]  ;;  %v235_v40 = vld [vmem:[%s820_s1 + $0x70] sm:$0xff] }
   0xe   : > { %606 = vmatpush3.bf16.msra.mxu1 %v605_v18  ;;  %v596_v39 = vpack.c.bf16 %v234_v35, %v233_v34  ;;  %v236_v41 = vld [vmem:[%s820_s1 + $0x78] sm:$0xff]  ;;  %v617_v42 = vpack.c.bf16 %v326_v38, %v325_v37  ;;  %s467_s30 = sshll.u32 %s826_s19, 3  ;;  %v327_v43 = vld [vmem:[%s822_s3 + $0x60] sm:$0xff]  ;;  %v328_v44 = vld [vmem:[%s822_s3 + $0x68] sm:$0xff] }
   0xf   : > { %607 = vmatprep.subr.bf16.mxu1 %v644_v3  ;;  %v599_v45 = vpack.c.bf16 %v236_v41, %v235_v40  ;;  %s215_s12 = scalar_lea.vmem %s819_s0, %s467_s30  ;;  %v620_v46 = vpack.c.bf16 %v328_v44, %v327_v43  ;;  %v329_v48 = vld [vmem:[%s822_s3 + $0x70] sm:$0xff]  ;;  %v330_v49 = vld [vmem:[%s822_s3 + $0x78] sm:$0xff]  ;;  %v469_v51 = vld [vmem:[%s821_s2] ss:$0 sm:$0xff]  ;;  %s219_s24 = scalar_lea.vmem %s824_s5, %s467_s30 }
  0x10   : > { %585 = vmatpush3.bf16.msra.mxu0 %v584_v15  ;;  %v220_v47 = vld [vmem:[%s215_s12] sm:$0xff]  ;;  %v623_v50 = vpack.c.bf16 %v330_v49, %v329_v48 }
  0x11   : > { %586 = vmatprep.subr.bf16.mxu0 %v644_v3  ;;  %v470_v56 = vld [vmem:[%s823_s4] ss:$0 sm:$0xff] }
  0x12   : > { %609 = vmatpush3.bf16.msra.mxu1 %v608_v24 }
  0x13   : > { %610 = vmatprep.subr.bf16.mxu1 %v644_v3 }
  0x14   : > { %588 = vmatpush3.bf16.msra.mxu0 %v587_v21 }
  0x15   : > { %589 = vmatprep.subr.bf16.mxu0 %v644_v3 }
  0x16   : > { %612 = vmatpush3.bf16.msra.mxu1 %v611_v30 }
  0x17   : > { %613 = vmatprep.subr.bf16.mxu1 %v644_v3 }
  0x18   : > { %591 = vmatpush3.bf16.msra.mxu0 %v590_v27 }
  0x19   : > { %592 = vmatprep.subr.bf16.mxu0 %v644_v3 }
  0x1a   : > { %615 = vmatpush3.bf16.msra.mxu1 %v614_v36 }
  0x1b   : > { %616 = vmatprep.subr.bf16.mxu1 %v644_v3 }
  0x1c   : > { %594 = vmatpush3.bf16.msra.mxu0 %v593_v33 }
  0x1d   : > { %595 = vmatprep.subr.bf16.mxu0 %v644_v3 }
  0x1e   : > { %618 = vmatpush3.bf16.msra.mxu1 %v617_v42 }
  0x1f   : > { %619 = vmatprep.subr.bf16.mxu1 %v644_v3 }
  0x20   : > { %597 = vmatpush3.bf16.msra.mxu0 %v596_v39 }
  0x21   : > { %598 = vmatprep.subr.bf16.mxu0 %v644_v3 }
  0x22   : > { %621 = vmatpush3.bf16.msra.mxu1 %v620_v46 }
  0x23   : > { %622 = vmatprep.subr.bf16.mxu1 %v644_v3 }
  0x24   : > { %600 = vmatpush3.bf16.msra.mxu0 %v599_v45 }
  0x26   : > { %624 = vmatpush3.bf16.msra.mxu1 %v623_v50 }
  0x27   : > { %540 = vmatmul.mubr.f32.vlgmr.msra.gmra.mrb[0].mxu0 %v220_v47 }
  0xfa   : > { %v310_v52 = vpop.f32.mrb[0].mxu0 }
  0xfb   : > { %v311_v53 = vadd.f32 %v469_v51, %v310_v52  ;;  %v541_v54 = vpop.f32.mrb[1].mxu0 }
  0xfd   : > { %v314_v55 = vmax.f32 %v311_v53, 0.0 }
  0xff   : > { %575 = vmatmul.mubr.f32.vlgmr.msra.gmra.mrb[0].mxu1 %v314_v55 }
 0x1d2   : > { %v404_v57 = vpop.f32.mrb[0].mxu1 }
 0x1d3   : > { %v405_v58 = vadd.f32 %v470_v56, %v404_v57  ;;  %v576_v59 = vpop.f32.mrb[1].mxu1 }
 0x1d5   : > { %408 = vst [vmem:[%s219_s24] sm:$0xff] %v405_v58 }
 0x1d6 PF: > { %s15_s18 = sadd.s32 1, %s642_s18  }
 0x1d7   : > { %p12_p4 = scmp.ge.s32.totalorder %s15_s18, 4  }
 0x1d9   :  { %14 = sbr.rel (!%p12_p4) target bundleno = 1 (0x1), region = 70 }

</bundles_post_ra>
